<compile_context>
chip_gen: v6e
topology: v6e:2x2x1
jax: 0.10.0
libtpu: 0.0.40
codegen_flags: <defaults>
</compile_context>

<pallas_src>
import jax
import jax.numpy as jnp
from jax.experimental import pallas as pl
from jax.experimental.pallas import tpu as pltpu

_LANE = 128      # lane width of a vreg
_SUB = 8         # sublane count of a vreg
_TR_MAX = 4096   # max rows-of-128 per block: 4096*128*4B = 2 MiB f32 block,
                 # ~6 MiB double-buffered (both inputs) -> fits v7x 32 MiB scoped VMEM


def _dice_partial_kernel(x_ref, t_ref, num_ref, den_ref):
    """Accumulate per-lane partial num/den sums for one batch row.

    x_ref, t_ref     : (1, TR, 128) VMEM tiles of logits / targets
    num_ref, den_ref : (1, 1, 128) f32 outputs, VMEM-resident across the
                       reduction (k) axis; accumulated in place.
    """
    k = pl.program_id(1)

    @pl.when(k == 0)
    def _():
        num_ref[...] = jnp.zeros_like(num_ref)
        den_ref[...] = jnp.zeros_like(den_ref)

    p = jax.nn.sigmoid(x_ref[...].astype(jnp.float32))
    t = t_ref[...].astype(jnp.float32)

    # num = sum(predict * target); den = sum(predict^2 + target^2)  (p=2)
    # Keep the cheap lane dimension un-reduced; the wrapper folds the 128
    # lanes at the end (O(B*128) work).
    num_ref[...] += jnp.sum(p * t, axis=1, keepdims=True)
    den_ref[...] += jnp.sum(p * p + t * t, axis=1, keepdims=True)


def binary_dice_loss(logits, target, reduction="mean"):
    """Pallas implementation of BinaryDiceLoss(smooth=1, p=2).forward."""
    assert logits.shape[0] == target.shape[0], "predict & target batch size don't match"
    B = logits.shape[0]

    x_flat = logits.reshape(B, -1)
    # bf16 is exact for binary {0,1} masks and halves target HBM traffic.
    # TODO(synk): keep f32 here if soft (non-binary) targets must be bit-exact.
    t_flat = target.reshape(B, -1).astype(jnp.bfloat16)
    N = x_flat.shape[1]

    # Choose the feature tile: TR rows of 128 lanes, TR a multiple of 8,
    # capped so the double-buffered blocks stay far inside scoped VMEM.
    R = pl.cdiv(N, _LANE)                                # rows of 128 needed
    TR = min(_TR_MAX, ((R + _SUB - 1) // _SUB) * _SUB)   # sublane-aligned
    R_pad = ((R + TR - 1) // TR) * TR                    # whole tiles only
    N_pad = R_pad * _LANE

    if N_pad != N:
        pad = N_pad - N
        # sigmoid(-1e9) == 0, so padded logits add nothing to num or den.
        x_flat = jnp.pad(x_flat, ((0, 0), (0, pad)), constant_values=-1e9)
        t_flat = jnp.pad(t_flat, ((0, 0), (0, pad)), constant_values=0)

    x3 = x_flat.reshape(B, R_pad, _LANE)
    t3 = t_flat.reshape(B, R_pad, _LANE)

    K = R_pad // TR
    grid = (B, K)  # batch parallel, feature-tile reduction last

    num_p, den_p = pl.pallas_call(
        _dice_partial_kernel,
        out_shape=(
            jax.ShapeDtypeStruct((B, 1, _LANE), jnp.float32),
            jax.ShapeDtypeStruct((B, 1, _LANE), jnp.float32),
        ),
        grid_spec=pltpu.PrefetchScalarGridSpec(
            num_scalar_prefetch=0,
            grid=grid,
            in_specs=[
                pl.BlockSpec((1, TR, _LANE), lambda b, k: (b, k, 0)),
                pl.BlockSpec((1, TR, _LANE), lambda b, k: (b, k, 0)),
            ],
            out_specs=[
                pl.BlockSpec((1, 1, _LANE), lambda b, k: (b, 0, 0)),
                pl.BlockSpec((1, 1, _LANE), lambda b, k: (b, 0, 0)),
            ],
        ),
        compiler_params=pltpu.CompilerParams(
            dimension_semantics=("parallel", "arbitrary"),
        ),
    )(x3, t3)

    num = jnp.sum(num_p, axis=(1, 2))   # (B,)
    den = jnp.sum(den_p, axis=(1, 2))   # (B,)
    loss = 1.0 - 2.0 * num / den

    if reduction == "mean":
        return loss.mean()
    elif reduction == "sum":
        return loss.sum()
    elif reduction == "none":
        return loss
    else:
        raise Exception("Unexpected reduction {}".format(reduction))


def _reference_loss(logits, target):
    B = logits.shape[0]
    p = jax.nn.sigmoid(logits).reshape(B, -1).astype(jnp.float32)
    t = target.reshape(B, -1).astype(jnp.float32)
    num = jnp.sum(p * t, axis=1)
    den = jnp.sum(p ** 2 + t ** 2, axis=1)
    return jnp.mean(1.0 - 2.0 * num / den)


if __name__ == "__main__":
    key = jax.random.PRNGKey(0)
    kx, kt = jax.random.split(key)

    B, C, H, W = 2, 4, 16, 16  # NCHW, like the PyTorch module's expected input
    x = jax.random.normal(kx, (B, C, H, W), dtype=jnp.float32)
    target = jax.random.bernoulli(kt, p=0.5, shape=(B, C, H, W)).astype(jnp.float32)

    loss = binary_dice_loss(x, target, reduction="mean")
    loss = jax.block_until_ready(loss)

    ref = jax.block_until_ready(_reference_loss(x, target))
    assert jnp.allclose(loss, ref, atol=1e-5, rtol=1e-5), (loss, ref)

    print("KERNEL_OK")
</pallas_src>

<mosaic_0001>
module attributes {stable_mosaic.version = 11 : i64} {
  func.func @_dice_partial_kernel(%arg0: i32, %arg1: i32, %arg2: memref<1x8x128xf32, #tpu.memory_space<vmem>>, %arg3: memref<1x8x128xbf16, #tpu.memory_space<vmem>>, %arg4: memref<1x1x128xf32, #tpu.memory_space<vmem>>, %arg5: memref<1x1x128xf32, #tpu.memory_space<vmem>>) attributes {dimension_semantics = [#tpu.dimension_semantics<parallel>, #tpu.dimension_semantics<arbitrary>], iteration_bounds = array<i64: 2, 1>, scalar_prefetch = 0 : i64, scratch_operands = 0 : i64, tpu.core_type = #tpu.core_type<tc>, window_params = [{transform_indices = @transform_0, window_bounds = array<i64: 1, 8, 128>}, {transform_indices = @transform_1, window_bounds = array<i64: 1, 8, 128>}, {transform_indices = @transform_2, window_bounds = array<i64: 1, 1, 128>}, {transform_indices = @transform_3, window_bounds = array<i64: 1, 1, 128>}]} {
    %c0_i32 = arith.constant 0 : i32
    %0 = arith.cmpi eq, %arg1, %c0_i32 : i32
    %1 = arith.extui %0 : i1 to i32
    %c0_i32_0 = arith.constant 0 : i32
    %2 = arith.cmpi ne, %1, %c0_i32_0 : i32
    scf.if %2 {
      %cst_20 = arith.constant 0.000000e+00 : f32
      %25 = vector.broadcast %cst_20 : f32 to vector<1x1x128xf32>
      %c0_21 = arith.constant 0 : index
      %c0_22 = arith.constant 0 : index
      %c0_23 = arith.constant 0 : index
      %26 = vector.load %arg4[%c0_21, %c0_22, %c0_23] : memref<1x1x128xf32, #tpu.memory_space<vmem>>, vector<1x1x128xf32>
      tpu.vector_store %arg4[%c0_21, %c0_22, %c0_23], %25 {strides = array<i32>} : memref<1x1x128xf32, #tpu.memory_space<vmem>>, vector<1x1x128xf32>,
      %cst_24 = arith.constant 0.000000e+00 : f32
      %27 = vector.broadcast %cst_24 : f32 to vector<1x1x128xf32>
      %c0_25 = arith.constant 0 : index
      %c0_26 = arith.constant 0 : index
      %c0_27 = arith.constant 0 : index
      %28 = vector.load %arg5[%c0_25, %c0_26, %c0_27] : memref<1x1x128xf32, #tpu.memory_space<vmem>>, vector<1x1x128xf32>
      tpu.vector_store %arg5[%c0_25, %c0_26, %c0_27], %27 {strides = array<i32>} : memref<1x1x128xf32, #tpu.memory_space<vmem>>, vector<1x1x128xf32>,
    } else {
    }
    %c0 = arith.constant 0 : index
    %c0_1 = arith.constant 0 : index
    %c0_2 = arith.constant 0 : index
    %3 = vector.load %arg2[%c0, %c0_1, %c0_2] : memref<1x8x128xf32, #tpu.memory_space<vmem>>, vector<1x8x128xf32>
    %4 = arith.negf %3 : vector<1x8x128xf32>
    %5 = math.exp %4 : vector<1x8x128xf32>
    %cst = arith.constant 1.000000e+00 : f32
    %6 = vector.broadcast %cst : f32 to vector<1x8x128xf32>
    %7 = arith.addf %6, %5 : vector<1x8x128xf32>
    %8 = arith.divf %6, %7 : vector<1x8x128xf32>
    %c0_3 = arith.constant 0 : index
    %c0_4 = arith.constant 0 : index
    %c0_5 = arith.constant 0 : index
    %9 = vector.load %arg3[%c0_3, %c0_4, %c0_5] : memref<1x8x128xbf16, #tpu.memory_space<vmem>>, vector<1x8x128xbf16>
    %10 = arith.extf %9 : vector<1x8x128xbf16> to vector<1x8x128xf32>
    %c0_6 = arith.constant 0 : index
    %c0_7 = arith.constant 0 : index
    %c0_8 = arith.constant 0 : index
    %11 = vector.load %arg4[%c0_6, %c0_7, %c0_8] : memref<1x1x128xf32, #tpu.memory_space<vmem>>, vector<1x1x128xf32>
    %12 = arith.mulf %8, %10 : vector<1x8x128xf32>
    %cst_9 = arith.constant dense<0.000000e+00> : vector<1x128xf32>
    %13 = vector.multi_reduction <add>, %12, %cst_9 [1] : vector<1x8x128xf32> to vector<1x128xf32>
    %14 = vector.shape_cast %13 : vector<1x128xf32> to vector<1x1x128xf32>
    %15 = arith.addf %11, %14 : vector<1x1x128xf32>
    %c0_10 = arith.constant 0 : index
    %c0_11 = arith.constant 0 : index
    %c0_12 = arith.constant 0 : index
    %16 = vector.load %arg4[%c0_10, %c0_11, %c0_12] : memref<1x1x128xf32, #tpu.memory_space<vmem>>, vector<1x1x128xf32>
    tpu.vector_store %arg4[%c0_10, %c0_11, %c0_12], %15 {strides = array<i32>} : memref<1x1x128xf32, #tpu.memory_space<vmem>>, vector<1x1x128xf32>,
    %c0_13 = arith.constant 0 : index
    %c0_14 = arith.constant 0 : index
    %c0_15 = arith.constant 0 : index
    %17 = vector.load %arg5[%c0_13, %c0_14, %c0_15] : memref<1x1x128xf32, #tpu.memory_space<vmem>>, vector<1x1x128xf32>
    %18 = arith.mulf %8, %8 : vector<1x8x128xf32>
    %19 = arith.mulf %10, %10 : vector<1x8x128xf32>
    %20 = arith.addf %18, %19 : vector<1x8x128xf32>
    %cst_16 = arith.constant dense<0.000000e+00> : vector<1x128xf32>
    %21 = vector.multi_reduction <add>, %20, %cst_16 [1] : vector<1x8x128xf32> to vector<1x128xf32>
    %22 = vector.shape_cast %21 : vector<1x128xf32> to vector<1x1x128xf32>
    %23 = arith.addf %17, %22 : vector<1x1x128xf32>
    %c0_17 = arith.constant 0 : index
    %c0_18 = arith.constant 0 : index
    %c0_19 = arith.constant 0 : index
    %24 = vector.load %arg5[%c0_17, %c0_18, %c0_19] : memref<1x1x128xf32, #tpu.memory_space<vmem>>, vector<1x1x128xf32>
    tpu.vector_store %arg5[%c0_17, %c0_18, %c0_19], %23 {strides = array<i32>} : memref<1x1x128xf32, #tpu.memory_space<vmem>>, vector<1x1x128xf32>,
    return
  }
  func.func @transform_0(%arg0: i32, %arg1: i32) -> (i32, i32, i32) {
    %c0_i32 = arith.constant 0 : i32
    %c0_i32_0 = arith.constant 0 : i32
    return %arg0, %arg1, %c0_i32 : i32, i32, i32
  }
  func.func @transform_1(%arg0: i32, %arg1: i32) -> (i32, i32, i32) {
    %c0_i32 = arith.constant 0 : i32
    %c0_i32_0 = arith.constant 0 : i32
    return %arg0, %arg1, %c0_i32 : i32, i32, i32
  }
  func.func @transform_2(%arg0: i32, %arg1: i32) -> (i32, i32, i32) {
    %c0_i32 = arith.constant 0 : i32
    %c0_i32_0 = arith.constant 0 : i32
    %c0_i32_1 = arith.constant 0 : i32
    return %arg0, %c0_i32, %c0_i32_0 : i32, i32, i32
  }
  func.func @transform_3(%arg0: i32, %arg1: i32) -> (i32, i32, i32) {
    %c0_i32 = arith.constant 0 : i32
    %c0_i32_0 = arith.constant 0 : i32
    %c0_i32_1 = arith.constant 0 : i32
    return %arg0, %c0_i32, %c0_i32_0 : i32, i32, i32
  }
}

</mosaic_0001>

<bundles_post_ra>
// kernel: tpu_custom_call.1
= control target key start
LH: loop header
LB: loop body
LE: loop exit
PB: predicated region body
PF: predicated region fallthrough
CT: control target
= control target key end

     0   :  { %9 = vsyncpa [#allocation3], 0  ;;  %s952_s0 = inlined_call_operand.hbm [shape: f32[2,8,128], index: 0, kind: input, shape index: {}]   ;;  %s953_s1 = inlined_call_operand.hbm [shape: bf16[2,8,128], index: 1, kind: input, shape index: {}]   ;;  %s954_s2 = inlined_call_operand.hbm [shape: f32[2,1,128], index: 2, kind: output, shape index: {0}]   ;;  %s955_s3 = inlined_call_operand.hbm [shape: f32[2,1,128], index: 3, kind: output, shape index: {1}]  }
   0x1   :  { %11 = vsyncpa [#allocation3 + $0x1], 0 }
   0x2   :  { %12 = vsyncpa [#allocation6], 0 }
   0x3   :  { %14 = vsyncpa [#allocation6 + $0x1], 0 }
   0x4   :  { %15 = vsyncpa [#allocation4], 0 }
   0x5   :  { %17 = vsyncpa [#allocation4 + $0x1], 0 }
   0x6   :  { %18 = vsyncpa [#allocation9], 0 }
   0x7   :  { %20 = vsyncpa [#allocation9 + $0x1], 0  ;;  %s734_s12 = smov 0   ;;  %s736_s13 = smov 0  }
   0x8   :  { %s738_s14 = smov 0   ;;  %s740_s15 = smov 0  }
   0x9   :  { %s742_s16 = smov 0   ;;  %s744_s17 = smov 0  }
   0xa LB: > { %s444_s18 = sadd.s32 4294967295, %s707_s17   ;;  %s445_s19 = sadd.s32 4294967294, %s707_s17   ;;  %s707_s17 = sphi %s744_s17, %s26_s17   ;;  %s703_s16 = sphi %s742_s16, %s967_s16   ;;  %s699_s15 = sphi %s740_s15, %s966_s15   ;;  %s695_s14 = sphi %s738_s14, %s965_s14   ;;  %s691_s13 = sphi %s736_s13, %s964_s13   ;;  %s687_s12 = sphi %s734_s12, %s963_s12  }
   0xb   : > { %s38_s20 = sadd.s32 1, %s703_s16  ;;  %s47_s21 = sadd.s32 1, %s695_s14 }
   0xc   : > { %p40_p0 = scmp.ge.s32.totalorder %s38_s20, 2  ;;  %p54_p1 = scmp.ne.s32.totalorder %s695_s14, %s691_s13 }
   0xd   : > { %p55_p2 = scmp.eq.s32.totalorder %s707_s17, 0  ;;  %p60_p3 = scmp.ne.s32.totalorder %s691_s13, %s687_s12 }
   0xe   : > { %s969_s20 = smov (%p40_p0, %s38_s20), 0  ;;  %p61_p5 = scmp.eq.s32.totalorder %s444_s18, 0 }
   0xf   : > { %p775_p4 = por %p55_p2, %p54_p1  ;;  %s42_s23 = ssub.s32 %s703_s16, %s969_s20 }
  0x10   : > { %p112_p6 = scmp.eq.s32.totalorder %s444_s18, 1  ;;  %p45_p7 = scmp.eq.s32.totalorder %s42_s23, 0 }
  0x11   : > { %p781_p8 = por %p61_p5, %p60_p3  ;;  %p118_p10 = scmp.eq.s32.totalorder %s445_s19, 1 }
  0x12   : > { %p785_p9 = por %p112_p6, %p54_p1  ;;  %p482_p13 = scmp.lt.s32.totalorder %s707_s17, 2 }
  0x13   : > { %s790_s26 = scalar_select %p45_p7, %s695_s14, %s47_s21  }
  0x14   : > { %p792_p11 = por %p118_p10, %p60_p3  ;;  %s799_s28 = sand.u32 1, %s695_s14  }
  0x15   : > { %s448_s29 = sshll.u32 %s799_s28, 3  ;;  %s449_s30 = sshll.u32 %s703_s16, 7 }
  0x16   : > { %s174_s6 = scalar_lea.hbm %s952_s0, %s449_s30  ;;  %s168_s7 = scalar_lea.vmem [#allocation2], %s448_s29 }
  0x17   : > { %s176_s8 = sshll.u32 %s168_s7, 4  ;;  %p808_p0 = pnand %p482_p13, %p775_p4  ;;  %s177_s8 = int_to_ptr.vmem [resolvable:$true] %s176_s8 }
  0x18   : > { %p452_p1 = scmp.ge.s32.totalorder %s707_s17, 1  ;;  %p200_p2 = scmp.lt.s32.totalorder %s707_s17, 3 }
  0x19   : > { %s165_s10 = scalar_lea.sflag [#allocation3], %s799_s28  ;;  %p539_p3 = pneg %p808_p0 }
  0x1a   : > { %s550_s11 = scalar_lea.vmem %s177_s8, 128  ;;  %s709_s18 = smov [#allocation2]  }
  0x1b   : > { %p551_p5 = scmp.ne.s32.totalorder %s177_s8, %s550_s11  ;;  %s555_s19 = sshll.u32 %s709_s18, 4  ;;  %s556_s19 = int_to_ptr.vmem [resolvable:$false] %s555_s19 }
  0x1c   : > { %s557_s21 = scalar_lea.vmem %s556_s19, 256  ;;  %p558_p4 = scmp.lt.s32.totalorder %s177_s8, %s556_s19 }
  0x1d   : > { %p553_p6 = pnand %p551_p5, %p539_p3  ;;  %p559_p10 = scmp.lt.s32.totalorder %s557_s21, %s550_s11 }
  0x1f   : > { %p554_p7 = pneg %p553_p6  ;;  %p560_p13 = por %p559_p10, %p558_p4 }
  0x21   : > { %p561_p12 = pnand %p560_p13, %p554_p7 }
  0x23   : > { %564 = shalt.err (!%p561_p12)
}
  0x24   : > { %471 = dma.hbm_to_vmem [thread:$0]  (!%p808_p0), %s174_s6, 128, %s177_s8, %s165_s10  }
  0x25   : > { %p826_p5 = pnand %p452_p1, %p200_p2  ;;  %s450_s23 = sshll.u32 %s799_s28, 2 }
  0x26   : > { %s451_s29 = sshll.u32 %s703_s16, 6  ;;  %s187_s7 = scalar_lea.vmem [#allocation5], %s450_s23 }
  0x27   : > { %s193_s5 = scalar_lea.hbm %s953_s1, %s451_s29  ;;  %s195_s11 = sshll.u32 %s187_s7, 4  ;;  %s196_s11 = int_to_ptr.vmem [resolvable:$true] %s195_s11 }
  0x28   : > { %s184_s18 = scalar_lea.sflag [#allocation6], %s799_s28  ;;  %s578_s19 = scalar_lea.vmem %s196_s11, 64 }
  0x29   : > { %p579_p12 = scmp.ne.s32.totalorder %s196_s11, %s578_s19  ;;  %s710_s6 = smov [#allocation5]  }
  0x2a   : > { %s583_s8 = sshll.u32 %s710_s6, 4  ;;  %s584_s8 = int_to_ptr.vmem [resolvable:$false] %s583_s8 }
  0x2b   : > { %p581_p6 = pnand %p579_p12, %p539_p3  ;;  %s585_s10 = scalar_lea.vmem %s584_s8, 128 }
  0x2c   : > { %p586_p1 = scmp.lt.s32.totalorder %s196_s11, %s584_s8  ;;  %p587_p2 = scmp.lt.s32.totalorder %s585_s10, %s578_s19 }
  0x2d   : > { %p582_p7 = pneg %p581_p6 }
  0x2e   : > { %p588_p4 = por %p587_p2, %p586_p1 }
  0x30   : > { %p589_p10 = pnand %p588_p4, %p582_p7 }
  0x32   : > { %592 = shalt.err (!%p589_p10)
}
  0x33   : > { %474 = dma.hbm_to_vmem [thread:$0]  (!%p808_p0), %s193_s5, 64, %s196_s11, %s184_s18  }
  0x34   : > { %204 = sbr.rel (%p826_p5) target bundleno = 145 (0x91), region = 28  ;;  %s844_s28 = sand.u32 (!%p826_p5), 1, %s691_s13  }
  0x35   : > { %s453_s21 = sshll.u32 (!%p826_p5), %s844_s28, 3  ;;  %s207_s23 = scalar_lea.sflag (!%p826_p5), [#allocation3], %s844_s28 }
  0x36   : > { %s210_s29 = scalar_lea.vmem (!%p826_p5), [#allocation2], %s453_s21 }
  0x39   : > { %670 = dma.done.wait (%p781_p8), %s207_s23, 128  }
  0x3a   : > { %672 = vsyncadd (%p781_p8), %s207_s23, 4294967168  ;;  %s454_s9 = sshll.u32 %s844_s28, 2  ;;  %s216_s22 = scalar_lea.sflag [#allocation6], %s844_s28 }
  0x3b   : > { %s219_s30 = scalar_lea.vmem [#allocation5], %s454_s9 }
  0x3c   : > { %674 = dma.done.wait (%p781_p8), %s216_s22, 64  }
  0x3d   : > { %676 = vsyncadd (%p781_p8), %s216_s22, 4294967232  ;;  %s859_s4 = scalar_lea.vmem [#allocation7], %s844_s28  ;;  %v711_v0 = vmov 0.0   ;;  %s863_s5 = scalar_lea.vmem [#allocation8], %s844_s28  ;;  %v256_v1 = vld [vmem:[%s210_s29] sm:$0xff] }
  0x3e   : > { %254 = vst [vmem:[%s859_s4] sm:$0x1] %v711_v0  ;;  %255 = vst [vmem:[%s863_s5] sm:$0x1] %v711_v0  ;;  %v455_v2 = vmul.f32 -1.442695, %v256_v1  ;;  %v263_v5 = vld [vmem:[%s219_s30] sm:$0xf] }
  0x3f   : > { %v264_v6 = vunpack.c.l.bf16 %v263_v5  ;;  %s456_s24 = sshll.u32 %s699_s15, 4  ;;  %s304_s7 = sshll.u32 %s859_s4, 4  ;;  %s876_s7 = int_to_ptr.vmem [resolvable:$true] %s304_s7 }
  0x40   : > { %533 = vpow2.f32 %v455_v2  ;;  %s317_s11 = sshll.u32 %s863_s5, 4  ;;  %s874_s6 = scalar_lea.hbm %s954_s2, %s456_s24  ;;  %s884_s11 = int_to_ptr.vmem [resolvable:$true] %s317_s11 }
  0x41   : > { %v277_v7 = vmul.f32 %v264_v6, %v264_v6  ;;  %s882_s10 = scalar_lea.hbm %s955_s3, %s456_s24  ;;  %s288_s21 = scalar_lea.sflag [#allocation4], %s844_s28 }
  0x42   : > { %s593_s23 = scalar_lea.vmem %s876_s7, 16  ;;  %s712_s29 = smov [#allocation7]  }
  0x43   : > { %p594_p8 = scmp.ne.s32.totalorder %s876_s7, %s593_s23  ;;  %s597_s9 = sshll.u32 %s712_s29, 4  ;;  %s598_s9 = int_to_ptr.vmem [resolvable:$false] %s597_s9 }
  0x44   : > { %s599_s22 = scalar_lea.vmem %s598_s9, 32  ;;  %p600_p13 = scmp.lt.s32.totalorder %s876_s7, %s598_s9 }
  0x45   : > { %v265_v21 = vld [vmem:[%s859_s4] sm:$0x1]  ;;  %p595_p0 = pnand %p594_p8, %p785_p9  ;;  %p601_p5 = scmp.lt.s32.totalorder %s599_s22, %s593_s23 }
  0x46   : > { %v275_v24 = vld [vmem:[%s863_s5] sm:$0x1] }
  0x47   : > { %p596_p3 = pneg %p595_p0  ;;  %p602_p12 = por %p601_p5, %p600_p13 }
  0x49   : > { %p603_p6 = pnand %p602_p12, %p596_p3 }
  0x4d   : > { %v534_v3 = vpop.eup %533 }
  0x4e   : > { %v260_v4 = vadd.f32 1.0, %v534_v3 }
  0x50   : > { %535 = vrcp.f32 %v260_v4 }
  0x5d   : > { %v536_v8 = vpop.eup %535 }
  0x5e   : > { %v266_v9 = vmul.f32 %v536_v8, %v264_v6  ;;  %v276_v10 = vmul.f32 %v536_v8, %v536_v8 }
  0x60   : > { %v267_v11 = vrot.slane %v266_v9, 4  ;;  %v278_v12 = vadd.f32 %v277_v7, %v276_v10 }
  0x62   : > { %v268_v13 = vadd.f32 %v267_v11, %v266_v9  ;;  %v279_v14 = vrot.slane %v278_v12, 4 }
  0x64   : > { %v269_v15 = vrot.slane %v268_v13, 2  ;;  %v280_v16 = vadd.f32 %v279_v14, %v278_v12 }
  0x66   : > { %v270_v17 = vadd.f32 %v269_v15, %v268_v13  ;;  %v281_v18 = vrot.slane %v280_v16, 2 }
  0x68   : > { %v271_v19 = vrot.slane %v270_v17, 1  ;;  %v282_v20 = vadd.f32 %v281_v18, %v280_v16 }
  0x6a   : > { %v272_v22 = vadd.f32 %v271_v19, %v270_v17  ;;  %v283_v23 = vrot.slane %v282_v20, 1 }
  0x6c   : > { %v273_v25 = vadd.f32 %v272_v22, %v265_v21  ;;  %v284_v26 = vadd.f32 %v283_v23, %v282_v20 }
  0x6e   : > { %274 = vst [vmem:[%s859_s4] sm:$0x1] %v273_v25  ;;  %v285_v27 = vadd.f32 %v284_v26, %v275_v24 }
  0x6f   : > { %606 = shalt.err (!%p603_p6)
}
  0x70   : > { %s607_s30 = scalar_lea.hbm %s874_s6, 16  ;;  %s611_s18 = scalar_lea.hbm %s954_s2, 32 }
  0x71   : > { %p608_p7 = scmp.ne.s32.totalorder %s874_s6, %s607_s30  ;;  %p612_p4 = scmp.lt.s32.totalorder %s874_s6, %s954_s2 }
  0x72   : > { %p613_p10 = scmp.lt.s32.totalorder %s611_s18, %s607_s30 }
  0x73   : > { %p609_p1 = pnand %p608_p7, %p785_p9 }
  0x74   : > { %p614_p8 = por %p613_p10, %p612_p4 }
  0x75   : > { %p610_p2 = pneg %p609_p1 }
  0x77   : > { %p615_p0 = pnand %p614_p8, %p610_p2 }
  0x79   : > { %618 = shalt.err (!%p615_p0)
}
  0x7a   : > { %464 = dma.vmem_to_hbm [thread:$0]  (%p785_p9), %s876_s7, 16, %s874_s6, %s288_s21   ;;  %286 = vst [vmem:[%s863_s5] sm:$0x1] %v285_v27 }
  0x7b   : > { %s292_s8 = scalar_lea.sflag [#allocation9], %s844_s28  ;;  %s619_s23 = scalar_lea.vmem %s884_s11, 16 }
  0x7c   : > { %p620_p3 = scmp.ne.s32.totalorder %s884_s11, %s619_s23  ;;  %s713_s29 = smov [#allocation8]  }
  0x7d   : > { %s623_s9 = sshll.u32 %s713_s29, 4  ;;  %s624_s9 = int_to_ptr.vmem [resolvable:$false] %s623_s9 }
  0x7e   : > { %p621_p13 = pnand %p620_p3, %p785_p9  ;;  %s625_s22 = scalar_lea.vmem %s624_s9, 32 }
  0x7f   : > { %p626_p12 = scmp.lt.s32.totalorder %s884_s11, %s624_s9  ;;  %p627_p6 = scmp.lt.s32.totalorder %s625_s22, %s619_s23 }
  0x80   : > { %p622_p5 = pneg %p621_p13 }
  0x81   : > { %p628_p7 = por %p627_p6, %p626_p12 }
  0x83   : > { %p629_p1 = pnand %p628_p7, %p622_p5 }
  0x85   : > { %632 = shalt.err (!%p629_p1)
}
  0x86   : > { %s633_s5 = scalar_lea.hbm %s882_s10, 16  ;;  %s637_s6 = scalar_lea.hbm %s955_s3, 32 }
  0x87   : > { %p634_p2 = scmp.ne.s32.totalorder %s882_s10, %s633_s5  ;;  %p638_p8 = scmp.lt.s32.totalorder %s882_s10, %s955_s3 }
  0x88   : > { %p639_p0 = scmp.lt.s32.totalorder %s637_s6, %s633_s5 }
  0x89   : > { %p635_p4 = pnand %p634_p2, %p785_p9 }
  0x8a   : > { %p640_p3 = por %p639_p0, %p638_p8 }
  0x8b   : > { %p636_p10 = pneg %p635_p4 }
  0x8d   : > { %p641_p13 = pnand %p640_p3, %p636_p10 }
  0x8f   : > { %644 = shalt.err (!%p641_p13)
}
  0x90   : > { %465 = dma.vmem_to_hbm [thread:$0]  (%p785_p9), %s884_s11, 16, %s882_s10, %s292_s8  }
  0x91 PF: > { %s329_s4 = sand.u32 1, %s687_s12   ;;  %p962_p5 = scmp.ge.s32.totalorder %s707_s17, 2 }
  0x92   : > { %s330_s24 = scalar_lea.sflag [#allocation4], %s329_s4 }
  0x93   : > { %p476_p12 = pnand %p962_p5, %p792_p11 }
  0x95   : > { %p477_p6 = pneg %p476_p12 }
  0x97   : > { %678 = dma.done.wait (%p477_p6), %s330_s24, 16  }
  0x98   : > { %680 = vsyncadd (%p477_p6), %s330_s24, 4294967280  ;;  %s338_s18 = scalar_lea.sflag [#allocation9], %s329_s4 }
  0x99   : > { %682 = dma.done.wait (%p477_p6), %s338_s18, 16  }
  0x9a   : > { %684 = vsyncadd (%p477_p6), %s338_s18, 4294967280  ;;  %s26_s17 = sadd.s32 1, %s707_s17   ;;  %s963_s12 = smov %s691_s13 }
  0x9b   : > { %p23_p7 = scmp.ge.s32.totalorder %s26_s17, 4   ;;  %s964_s13 = smov %s695_s14 }
  0x9c   : > { %s965_s14 = smov %s790_s26  ;;  %s966_s15 = smov %s703_s16 }
  0x9d   : > { %s967_s16 = smov %s969_s20  ;;  %25 = sbr.rel (!%p23_p7) target bundleno = 10 (0xa), region = 107 }
  0xa2   :  { %342 = vsyncpa [#allocation3], 1 }
  0xa3   :  { %344 = vsyncpa [#allocation3 + $0x1], 1 }
  0xa4   :  { %345 = vsyncpa [#allocation6], 1 }
  0xa5   :  { %347 = vsyncpa [#allocation6 + $0x1], 1 }
  0xa6   :  { %348 = vsyncpa [#allocation4], 1 }
  0xa7   :  { %350 = vsyncpa [#allocation4 + $0x1], 1 }
  0xa8   :  { %351 = vsyncpa [#allocation9], 1 }
  0xa9   :  { %353 = vsyncpa [#allocation9 + $0x1], 1 }

</bundles_post_ra>
